<compile_context>
chip_gen: v6e
topology: v6e:2x2x1
jax: 0.10.0
libtpu: 0.0.40
codegen_flags: <defaults>
</compile_context>

<pallas_src>
import functools

import jax
import jax.numpy as jnp
from jax.experimental import pallas as pl
from jax.experimental.pallas import tpu as pltpu

LANE = 128


def _round_up(v, m):
    return ((v + m - 1) // m) * m


def _pad2d(a, rows, cols):
    return jnp.pad(a, ((0, rows - a.shape[0]), (0, cols - a.shape[1])))


# ---------------------------------------------------------------------------
# Kernels
# ---------------------------------------------------------------------------

def _mlp_kernel(n_layers, x_ref, *refs):
    """Row-strip MLP (norm=None, plain_last=True): Linear(+ReLU except last layer)."""
    params, out_ref = refs[:-1], refs[-1]
    h = x_ref[...]                              # bf16 [tile_n, d_in_pad]
    for i in range(n_layers):
        w = params[2 * i][...]                  # bf16 [d_in_pad, d_out_pad]
        b = params[2 * i + 1][...]              # f32  [1, d_out_pad]
        acc = jnp.dot(h, w, preferred_element_type=jnp.float32) + b
        if i < n_layers - 1:
            acc = jnp.maximum(acc, 0.0)         # elementwise kept in f32
        h = acc.astype(jnp.bfloat16)
    out_ref[...] = h


def _gcn_kernel(adj_ref, h_ref, w_ref, b_ref, out_ref):
    """One GCNConv(normalize=False) layer + ReLU for a strip of destination rows.

    out[strip] = relu((adj[strip, :] @ h) @ W + b)   ((adj@h)@W == adj@(h@W))
    """
    agg = jnp.dot(adj_ref[...], h_ref[...], preferred_element_type=jnp.float32)
    acc = jnp.dot(agg.astype(jnp.bfloat16), w_ref[...],
                  preferred_element_type=jnp.float32) + b_ref[...]
    out_ref[...] = jnp.maximum(acc, 0.0).astype(jnp.bfloat16)
    # TODO(synk): F.dropout(p, training=True) not implemented; forward assumes eval mode (no-op).


def _decoder_kernel(n_layers, out_dim, h_ref, *refs):
    """Decoder MLP + log_softmax masked to the first `out_dim` (unpadded) columns."""
    params, out_ref = refs[:-1], refs[-1]
    h = h_ref[...]
    acc = None
    for i in range(n_layers):
        w = params[2 * i][...]
        b = params[2 * i + 1][...]
        acc = jnp.dot(h, w, preferred_element_type=jnp.float32) + b
        if i < n_layers - 1:
            h = jnp.maximum(acc, 0.0).astype(jnp.bfloat16)
    # masked log_softmax over dim=1 (only the first out_dim lanes are real classes)
    col = jax.lax.broadcasted_iota(jnp.int32, acc.shape, 1)
    valid = col < out_dim
    neg = jnp.float32(-1e30)
    hm = jnp.where(valid, acc, neg)
    m = jnp.max(hm, axis=1, keepdims=True)
    ex = jnp.where(valid, jnp.exp(hm - m), 0.0)
    lse = m + jnp.log(jnp.sum(ex, axis=1, keepdims=True))
    out_ref[...] = (hm - lse).astype(out_ref.dtype)   # padded lanes sliced off outside


# ---------------------------------------------------------------------------
# Wrapper
# ---------------------------------------------------------------------------

def _compiler_params():
    return pltpu.CompilerParams(
        dimension_semantics=("parallel",),
        vmem_limit_bytes=48 * 1024 * 1024,
    )


def _full_spec(shape):
    return pl.BlockSpec(shape, lambda i: (0, 0))


def _pack_params(params):
    """Pad each (w, b) to 128-lane multiples; w -> bf16, b -> f32 [1, d_out_pad]."""
    flat, dims = [], []
    for (w, b) in params:
        din_p = _round_up(w.shape[0], LANE)
        dout_p = _round_up(w.shape[1], LANE)
        wp = _pad2d(w.astype(jnp.float32), din_p, dout_p).astype(jnp.bfloat16)
        bp = _pad2d(b.reshape(1, -1).astype(jnp.float32), 1, dout_p)
        flat += [wp, bp]
        dims.append((din_p, dout_p))
    return flat, dims


def gnn_forward(x, edge_index, enc_params, gcn_params, dec_params, *, tile_n=128):
    """x: [N, F_in] float32; edge_index: [2, E] int32 (row 0 = src, row 1 = dst)."""
    assert tile_n % LANE == 0
    n, f_in = x.shape
    n_pad = _round_up(n, tile_n)
    f_in_pad = _round_up(f_in, LANE)
    out_dim = dec_params[-1][0].shape[1]
    out_pad = _round_up(out_dim, LANE)
    n_tiles = n_pad // tile_n
    cp = _compiler_params()

    # Cast / pad in the wrapper so the HBM->VMEM DMAs move bf16 bytes.
    x_p = _pad2d(x.astype(jnp.float32), n_pad, f_in_pad).astype(jnp.bfloat16)
    src, dst = edge_index[0], edge_index[1]
    # Dense sum-aggregation adjacency: adj[dst, src] += 1 (edge counts are exact in bf16).
    adj = jnp.zeros((n_pad, n_pad), jnp.float32).at[dst, src].add(1.0).astype(jnp.bfloat16)

    enc_flat, enc_dims = _pack_params(enc_params)
    gcn_flat, gcn_dims = _pack_params(gcn_params)
    dec_flat, dec_dims = _pack_params(dec_params)
    d_emb_pad = enc_dims[-1][1]

    # ---- encoder MLP: row-tiled, weights resident (constant index map) ----
    in_specs = [pl.BlockSpec((tile_n, f_in_pad), lambda i: (i, 0))]
    for (di, do) in enc_dims:
        in_specs += [_full_spec((di, do)), _full_spec((1, do))]
    h = pl.pallas_call(
        functools.partial(_mlp_kernel, len(enc_params)),
        grid=(n_tiles,),
        in_specs=in_specs,
        out_specs=pl.BlockSpec((tile_n, d_emb_pad), lambda i: (i, 0)),
        out_shape=jax.ShapeDtypeStruct((n_pad, d_emb_pad), jnp.bfloat16),
        compiler_params=cp,
    )(x_p, *enc_flat)

    # ---- r_hops x (GCNConv(normalize=False) + ReLU), one row-tiled call per hop ----
    for li, (di, do) in enumerate(gcn_dims):
        h = pl.pallas_call(
            _gcn_kernel,
            grid=(n_tiles,),
            in_specs=[
                pl.BlockSpec((tile_n, n_pad), lambda i: (i, 0)),   # adjacency row strip
                _full_spec((n_pad, di)),                           # full h, stays resident
                _full_spec((di, do)),
                _full_spec((1, do)),
            ],
            out_specs=pl.BlockSpec((tile_n, do), lambda i: (i, 0)),
            out_shape=jax.ShapeDtypeStruct((n_pad, do), jnp.bfloat16),
            compiler_params=cp,
        )(adj, h, gcn_flat[2 * li], gcn_flat[2 * li + 1])

    # ---- decoder MLP + masked log_softmax, lane-dense 128-wide padded output ----
    in_specs = [pl.BlockSpec((tile_n, h.shape[1]), lambda i: (i, 0))]
    for (di, do) in dec_dims:
        in_specs += [_full_spec((di, do)), _full_spec((1, do))]
    out_p = pl.pallas_call(
        functools.partial(_decoder_kernel, len(dec_params), out_dim),
        grid=(n_tiles,),
        in_specs=in_specs,
        out_specs=pl.BlockSpec((tile_n, out_pad), lambda i: (i, 0)),
        out_shape=jax.ShapeDtypeStruct((n_pad, out_pad), jnp.float32),
        compiler_params=cp,
    )(h, *dec_flat)

    return out_p[:n, :out_dim]


# ---------------------------------------------------------------------------
# Pure-JAX reference (mirrors the kernel's bf16-matmul / f32-accumulate math)
# ---------------------------------------------------------------------------

def gnn_reference(x, adj_bf16, enc_params, gcn_params, dec_params):
    h = x.astype(jnp.bfloat16)
    for i, (w, b) in enumerate(enc_params):
        a = jnp.dot(h, w.astype(jnp.bfloat16), preferred_element_type=jnp.float32) + b
        if i < len(enc_params) - 1:
            a = jnp.maximum(a, 0.0)
        h = a.astype(jnp.bfloat16)
    for (w, b) in gcn_params:
        agg = jnp.dot(adj_bf16, h, preferred_element_type=jnp.float32)
        a = jnp.dot(agg.astype(jnp.bfloat16), w.astype(jnp.bfloat16),
                    preferred_element_type=jnp.float32) + b
        h = jnp.maximum(a, 0.0).astype(jnp.bfloat16)
    a = None
    for i, (w, b) in enumerate(dec_params):
        a = jnp.dot(h, w.astype(jnp.bfloat16), preferred_element_type=jnp.float32) + b
        if i < len(dec_params) - 1:
            h = jnp.maximum(a, 0.0).astype(jnp.bfloat16)
    return jax.nn.log_softmax(a, axis=1)


def _make_linear_params(key, d_in, d_out):
    kw, kb = jax.random.split(key)
    scale = 1.0 / jnp.sqrt(jnp.float32(d_in))
    w = jax.random.uniform(kw, (d_in, d_out), jnp.float32, -scale, scale)
    b = jax.random.uniform(kb, (d_out,), jnp.float32, -scale, scale)
    return w, b


if __name__ == "__main__":
    key = jax.random.PRNGKey(0)

    # Module hyperparameters (small synthetic config).
    encoder_dimensions = [16, 32, 32]   # MLP: 16 -> 32 -> 32
    decoder_dimensions = [32, 32, 8]    # MLP: 32 -> 32 -> 8
    r_hops = 2                          # two GCNConv(32, 32, normalize=False) layers
    embedding_dim = encoder_dimensions[-1]

    num_nodes = 256                     # 2 row tiles of 128 -> exercises the parallel grid
    num_edges = 1024

    keys = jax.random.split(key, 16)

    enc_params = []
    for i in range(len(encoder_dimensions) - 1):
        enc_params.append(
            _make_linear_params(keys[i], encoder_dimensions[i], encoder_dimensions[i + 1]))
    gcn_params = []
    for r in range(r_hops):
        gcn_params.append(_make_linear_params(keys[4 + r], embedding_dim, embedding_dim))
    dec_params = []
    for i in range(len(decoder_dimensions) - 1):
        dec_params.append(
            _make_linear_params(keys[8 + i], decoder_dimensions[i], decoder_dimensions[i + 1]))

    x = jax.random.normal(keys[12], (num_nodes, encoder_dimensions[0]), jnp.float32)
    edge_index = jax.random.randint(keys[13], (2, num_edges), 0, num_nodes, jnp.int32)

    out = gnn_forward(x, edge_index, enc_params, gcn_params, dec_params)
    out = jax.block_until_ready(out)

    # Sanity: shape, finiteness, rows of exp(log_softmax) sum to ~1.
    assert out.shape == (num_nodes, decoder_dimensions[-1])
    assert bool(jnp.all(jnp.isfinite(out)))
    row_sums = jnp.sum(jnp.exp(out), axis=1)
    assert bool(jnp.all(jnp.abs(row_sums - 1.0) < 1e-4))

    # Cross-check against a pure-JAX reference using the same bf16/f32 pipeline.
    adj_ref = jnp.zeros((num_nodes, num_nodes), jnp.float32).at[
        edge_index[1], edge_index[0]].add(1.0).astype(jnp.bfloat16)
    ref = gnn_reference(x, adj_ref, enc_params, gcn_params, dec_params)
    max_err = float(jnp.max(jnp.abs(out - ref)))
    assert max_err < 2e-2, max_err

    print("KERNEL_OK")
</pallas_src>

<mosaic_0001>
module attributes {stable_mosaic.version = 11 : i64} {
  func.func @_mlp_kernel(%arg0: i32, %arg1: memref<128x128xbf16, #tpu.memory_space<vmem>>, %arg2: memref<128x128xbf16, #tpu.memory_space<vmem>>, %arg3: memref<1x128xf32, #tpu.memory_space<vmem>>, %arg4: memref<128x128xbf16, #tpu.memory_space<vmem>>, %arg5: memref<1x128xf32, #tpu.memory_space<vmem>>, %arg6: memref<128x128xbf16, #tpu.memory_space<vmem>>) attributes {dimension_semantics = [#tpu.dimension_semantics<parallel>], iteration_bounds = array<i64: 2>, scalar_prefetch = 0 : i64, scratch_operands = 0 : i64, tpu.core_type = #tpu.core_type<tc>, window_params = [{transform_indices = @transform_0, window_bounds = array<i64: 128, 128>}, {pipeline_mode = #tpu.pipeline_mode<synchronous>, transform_indices = @transform_1, window_bounds = array<i64: 128, 128>}, {pipeline_mode = #tpu.pipeline_mode<synchronous>, transform_indices = @transform_2, window_bounds = array<i64: 1, 128>}, {pipeline_mode = #tpu.pipeline_mode<synchronous>, transform_indices = @transform_3, window_bounds = array<i64: 128, 128>}, {pipeline_mode = #tpu.pipeline_mode<synchronous>, transform_indices = @transform_4, window_bounds = array<i64: 1, 128>}, {transform_indices = @transform_5, window_bounds = array<i64: 128, 128>}]} {
    %c0 = arith.constant 0 : index
    %c0_0 = arith.constant 0 : index
    %0 = vector.load %arg1[%c0, %c0_0] : memref<128x128xbf16, #tpu.memory_space<vmem>>, vector<128x128xbf16>
    %c0_1 = arith.constant 0 : index
    %c0_2 = arith.constant 0 : index
    %1 = vector.load %arg2[%c0_1, %c0_2] : memref<128x128xbf16, #tpu.memory_space<vmem>>, vector<128x128xbf16>
    %c0_3 = arith.constant 0 : index
    %c0_4 = arith.constant 0 : index
    %2 = vector.load %arg3[%c0_3, %c0_4] : memref<1x128xf32, #tpu.memory_space<vmem>>, vector<1x128xf32>
    %cst = arith.constant dense<0.000000e+00> : vector<128x128xf32>
    %3 = tpu.matmul %0, %1, %cst {dimension_numbers = #tpu.dot_dimension_numbers<[1], [0], [0], [1], [0, 0, 1, 1], [], []>} : vector<128x128xbf16>, vector<128x128xbf16>, vector<128x128xf32> -> vector<128x128xf32>
    %4 = vector.broadcast %2 : vector<1x128xf32> to vector<128x128xf32>
    %5 = arith.addf %3, %4 : vector<128x128xf32>
    %cst_5 = arith.constant 0.000000e+00 : f32
    %6 = vector.broadcast %cst_5 : f32 to vector<128x128xf32>
    %7 = arith.maximumf %5, %6 : vector<128x128xf32>
    %8 = arith.truncf %7 : vector<128x128xf32> to vector<128x128xbf16>
    %c0_6 = arith.constant 0 : index
    %c0_7 = arith.constant 0 : index
    %9 = vector.load %arg4[%c0_6, %c0_7] : memref<128x128xbf16, #tpu.memory_space<vmem>>, vector<128x128xbf16>
    %c0_8 = arith.constant 0 : index
    %c0_9 = arith.constant 0 : index
    %10 = vector.load %arg5[%c0_8, %c0_9] : memref<1x128xf32, #tpu.memory_space<vmem>>, vector<1x128xf32>
    %cst_10 = arith.constant dense<0.000000e+00> : vector<128x128xf32>
    %11 = tpu.matmul %8, %9, %cst_10 {dimension_numbers = #tpu.dot_dimension_numbers<[1], [0], [0], [1], [0, 0, 1, 1], [], []>} : vector<128x128xbf16>, vector<128x128xbf16>, vector<128x128xf32> -> vector<128x128xf32>
    %12 = vector.broadcast %10 : vector<1x128xf32> to vector<128x128xf32>
    %13 = arith.addf %11, %12 : vector<128x128xf32>
    %14 = arith.truncf %13 : vector<128x128xf32> to vector<128x128xbf16>
    %c0_11 = arith.constant 0 : index
    %c0_12 = arith.constant 0 : index
    %15 = vector.load %arg6[%c0_11, %c0_12] : memref<128x128xbf16, #tpu.memory_space<vmem>>, vector<128x128xbf16>
    tpu.vector_store %arg6[%c0_11, %c0_12], %14 {strides = array<i32>} : memref<128x128xbf16, #tpu.memory_space<vmem>>, vector<128x128xbf16>,
    return
  }
  func.func @transform_0(%arg0: i32) -> (i32, i32) {
    %c0_i32 = arith.constant 0 : i32
    %c0_i32_0 = arith.constant 0 : i32
    return %arg0, %c0_i32 : i32, i32
  }
  func.func @transform_1(%arg0: i32) -> (i32, i32) {
    %c0_i32 = arith.constant 0 : i32
    %c0_i32_0 = arith.constant 0 : i32
    %c0_i32_1 = arith.constant 0 : i32
    return %c0_i32, %c0_i32_0 : i32, i32
  }
  func.func @transform_2(%arg0: i32) -> (i32, i32) {
    %c0_i32 = arith.constant 0 : i32
    %c0_i32_0 = arith.constant 0 : i32
    %c0_i32_1 = arith.constant 0 : i32
    return %c0_i32, %c0_i32_0 : i32, i32
  }
  func.func @transform_3(%arg0: i32) -> (i32, i32) {
    %c0_i32 = arith.constant 0 : i32
    %c0_i32_0 = arith.constant 0 : i32
    %c0_i32_1 = arith.constant 0 : i32
    return %c0_i32, %c0_i32_0 : i32, i32
  }
  func.func @transform_4(%arg0: i32) -> (i32, i32) {
    %c0_i32 = arith.constant 0 : i32
    %c0_i32_0 = arith.constant 0 : i32
    %c0_i32_1 = arith.constant 0 : i32
    return %c0_i32, %c0_i32_0 : i32, i32
  }
  func.func @transform_5(%arg0: i32) -> (i32, i32) {
    %c0_i32 = arith.constant 0 : i32
    %c0_i32_0 = arith.constant 0 : i32
    return %arg0, %c0_i32 : i32, i32
  }
}

</mosaic_0001>

<bundles_post_ra>
// kernel: tpu_custom_call.1
= control target key start
LH: loop header
LB: loop body
LE: loop exit
PB: predicated region body
PF: predicated region fallthrough
CT: control target
= control target key end

     0   :  { %10 = vsyncpa [#allocation3], 0  ;;  %s1617_s0 = inlined_call_operand.hbm [shape: bf16[256,128], index: 0, kind: input, shape index: {}]   ;;  %s1618_s1 = inlined_call_operand.hbm [shape: bf16[128,128], index: 1, kind: input, shape index: {}]   ;;  %s1619_s2 = inlined_call_operand.vmem [shape: f32[1,128], index: 2, kind: input, shape index: {}]   ;;  %s1620_s3 = inlined_call_operand.hbm [shape: bf16[128,128], index: 3, kind: input, shape index: {}]   ;;  %s1621_s4 = inlined_call_operand.vmem [shape: f32[1,128], index: 4, kind: input, shape index: {}]   ;;  %s1622_s5 = inlined_call_operand.hbm [shape: bf16[256,128], index: 5, kind: output, shape index: {}]  }
   0x1   :  { %12 = vsyncpa [#allocation3 + $0x1], 0 }
   0x2   :  { %13 = vsyncpa [#allocation6], 0 }
   0x3   :  { %14 = vsyncpa [#allocation4], 0 }
   0x4   :  { %16 = vsyncpa [#allocation4 + $0x1], 0  ;;  %s1389_s18 = smov 0   ;;  %s1391_s19 = smov 0  }
   0x5   :  { %s1393_s20 = smov 0   ;;  %s1395_s21 = smov 0  }
   0x6 LB: > { %s1410_s22 = sadd.s32 4294967295, %s1349_s21   ;;  %s885_s23 = sadd.s32 4294967294, %s1349_s21   ;;  %s1349_s21 = sphi %s1395_s21, %s1645_s21   ;;  %s1345_s20 = sphi %s1393_s20, %s1644_s20   ;;  %s1341_s19 = sphi %s1391_s19, %s1643_s19   ;;  %s1337_s18 = sphi %s1389_s18, %s1642_s18  }
   0x7   : > { %p42_p0 = scmp.ne.s32.totalorder %s1341_s19, %s1337_s18  ;;  %p1623_p1 = scmp.eq.s32.totalorder %s1410_s22, 0 }
   0x8   : > { %p150_p2 = scmp.eq.s32.totalorder %s1410_s22, 1  ;;  %p156_p3 = scmp.eq.s32.totalorder %s885_s23, 1 }
   0x9   : > { %p1419_p4 = por %p1623_p1, %p42_p0  ;;  %p886_p5 = scmp.ge.s32.totalorder %s1349_s21, 1 }
   0xa   : > { %p1424_p6 = por %p156_p3, %p42_p0  ;;  %p163_p7 = scmp.lt.s32.totalorder %s1349_s21, 3 }
   0xb   : > { %s1628_s24 = scalar_select %p1419_p4, 1, 0 }
   0xc   : > { %s1629_s25 = scalar_select %p1424_p6, 1, 0 }
   0xd   : > { %p1429_p8 = pnand %p886_p5, %p163_p7  ;;  %s1351_s27 = smov [#allocation5]  }
   0xe   : > { %s175_s28 = sshll.u32 %s1351_s27, 4  ;;  %s1352_s30 = smov [#allocation7]   ;;  %s176_s28 = int_to_ptr.vmem [resolvable:$true] %s175_s28 }
   0xf   : > { %s1630_s26 = scalar_select %p1429_p8, 1, 0 }
  0x10   : > { %p1118_p9 = pneg %p1429_p8  ;;  %s191_s6 = sshll.u32 %s1352_s30, 4  ;;  %s192_s6 = int_to_ptr.vmem [resolvable:$true] %s191_s6 }
  0x11   : > { %s1212_s7 = scalar_lea.vmem %s176_s28, 1024  ;;  %p1220_p5 = scmp.lt.s32.totalorder %s176_s28, %s176_s28 }
  0x12   : > { %p1438_p11 = pnand %p1118_p9, %p1623_p1  ;;  %p1213_p13 = scmp.ne.s32.totalorder %s176_s28, %s1212_s7 }
  0x13   : > { %p1221_p7 = scmp.lt.s32.totalorder %s1212_s7, %s1212_s7 }
  0x14   : > { %p1203_p12 = pneg %p1438_p11 }
  0x15   : > { %p1222_p10 = por %p1221_p7, %p1220_p5 }
  0x16   : > { %p1215_p0 = pnand %p1213_p13, %p1203_p12 }
  0x18   : > { %p1216_p3 = pneg %p1215_p0 }
  0x1a   : > { %p1223_p9 = pnand %p1222_p10, %p1216_p3 }
  0x1c   : > { %1226 = shalt.err (!%p1223_p9)
}
  0x1d   : > { %s1624_s8 = smov 64   ;;  %s1354_s9 = smov 4  }
  0x1e   : > { %1121 = dma.hbm_to_vmem [thread:$0]  (!%p1438_p11), %s1618_s1, 1024, %s176_s28, [#allocation6], %s1624_s8, %s1624_s8, %s1354_s9  }
  0x1f   : > { %s1238_s12 = scalar_lea.vmem %s192_s6, 1024  ;;  %p1246_p10 = scmp.lt.s32.totalorder %s192_s6, %s192_s6 }
  0x20   : > { %p1239_p13 = scmp.ne.s32.totalorder %s192_s6, %s1238_s12  ;;  %p1247_p3 = scmp.lt.s32.totalorder %s1238_s12, %s1238_s12 }
  0x22   : > { %p1241_p0 = pnand %p1239_p13, %p1203_p12  ;;  %p1248_p7 = por %p1247_p3, %p1246_p10 }
  0x24   : > { %p1242_p5 = pneg %p1241_p0 }
  0x26   : > { %p1249_p9 = pnand %p1248_p7, %p1242_p5 }
  0x28   : > { %1252 = shalt.err (!%p1249_p9)
}
  0x29   : > { %1124 = dma.hbm_to_vmem [thread:$0]  (!%p1438_p11), %s1620_s3, 1024, %s192_s6, [#allocation6], %s1624_s8, %s1624_s8, %s1354_s9  }
  0x2a   : > { %s1467_s15 = sadd.s32 1, %s1349_s21   ;;  %s29_s16 = sadd.s32 1, %s1345_s20 }
  0x2b   : > { %s26_s17 = ssub.s32 %s1349_s21, %s1467_s15  ;;  %p36_p12 = scmp.ne.s32.totalorder %s1345_s20, %s1341_s19 }
  0x2c   : > { %p27_p13 = scmp.eq.s32.totalorder %s26_s17, 0  ;;  %p37_p0 = scmp.eq.s32.totalorder %s1349_s21, 0 }
  0x2d   : > { %p1477_p5 = por %p150_p2, %p36_p12  ;;  %p1135_p10 = scmp.lt.s32.totalorder %s1349_s21, 2 }
  0x2e   : > { %s1483_s27 = scalar_select %p27_p13, %s1345_s20, %s29_s16  }
  0x2f   : > { %s1632_s23 = scalar_select %p1477_p5, 1, 0 }
  0x30   : > { %p38_p3 = por %p37_p0, %p36_p12  ;;  %s208_s28 = sand.u32 1, %s1345_s20  }
  0x31   : > { %s890_s29 = sshll.u32 %s208_s28, 6  ;;  %s945_s30 = sshll.u32 %s1349_s21, 10 }
  0x32   : > { %s1490_s10 = scalar_lea.hbm %s1617_s0, %s945_s30  ;;  %s212_s11 = scalar_lea.vmem [#allocation2], %s890_s29 }
  0x33   : > { %s219_s12 = sshll.u32 %s212_s11, 4  ;;  %p1494_p2 = pnand %p1135_p10, %p38_p3  ;;  %s1492_s12 = int_to_ptr.vmem [resolvable:$true] %s219_s12 }
  0x34   : > { %s1498_s14 = scalar_lea.sflag [#allocation3], %s208_s28  ;;  %s1253_s16 = scalar_lea.hbm %s1490_s10, 1024 }
  0x35   : > { %p1254_p11 = scmp.ne.s32.totalorder %s1490_s10, %s1253_s16  ;;  %p1255_p7 = pneg %p1494_p2 }
  0x36   : > { %s1258_s29 = scalar_lea.hbm %s1617_s0, 2048  ;;  %p1259_p13 = scmp.lt.s32.totalorder %s1490_s10, %s1617_s0 }
  0x37   : > { %p1256_p9 = pnand %p1255_p7, %p1254_p11  ;;  %p1260_p0 = scmp.lt.s32.totalorder %s1258_s29, %s1253_s16 }
  0x39   : > { %p1257_p12 = pneg %p1256_p9  ;;  %p1261_p10 = por %p1260_p0, %p1259_p13 }
  0x3b   : > { %p1262_p3 = pnand %p1261_p10, %p1257_p12 }
  0x3d   : > { %1265 = shalt.err (!%p1262_p3)
}
  0x3e   : > { %s1266_s28 = scalar_lea.vmem %s1492_s12, 1024  ;;  %s1355_s11 = smov [#allocation2]  }
  0x3f   : > { %p1267_p1 = scmp.ne.s32.totalorder %s1492_s12, %s1266_s28  ;;  %s1271_s8 = sshll.u32 %s1355_s11, 4  ;;  %s1272_s8 = int_to_ptr.vmem [resolvable:$false] %s1271_s8 }
  0x40   : > { %s1273_s17 = scalar_lea.vmem %s1272_s8, 2048  ;;  %p1274_p9 = scmp.lt.s32.totalorder %s1492_s12, %s1272_s8 }
  0x41   : > { %p1269_p6 = pnand %p1267_p1, %p1255_p7  ;;  %p1275_p5 = scmp.lt.s32.totalorder %s1273_s17, %s1266_s28 }
  0x43   : > { %p1270_p11 = pneg %p1269_p6  ;;  %p1276_p4 = por %p1275_p5, %p1274_p9 }
  0x45   : > { %p1277_p8 = pnand %p1276_p4, %p1270_p11 }
  0x47   : > { %1280 = shalt.err (!%p1277_p8)
}
  0x48   : > { %s1634_s16 = smov 64   ;;  %p1635_p1 = scmp.ne.s32.totalorder %s1630_s26, 0 }
  0x49   : > { %1128 = dma.hbm_to_vmem [thread:$0]  (!%p1494_p2), %s1490_s10, 1024, %s1492_s12, %s1498_s14, %s1634_s16, %s1634_s16, %s1354_s9  }
  0x4a   : > { %231 = sbr.rel (%p1635_p1) target bundleno = 563 (0x233), region = 40  ;;  %s1525_s30 = sand.u32 (!%p1635_p1), 1, %s1341_s19  }
  0x4b   : > { %s894_s8 = sshll.u32 (!%p1635_p1), %s1525_s30, 6  ;;  %s234_s29 = scalar_lea.sflag (!%p1635_p1), [#allocation3], %s1525_s30 }
  0x4c   : > { %s1531_s13 = scalar_lea.vmem (!%p1635_p1), [#allocation2], %s894_s8  ;;  %p1636_p4 = scmp.ne.s32.totalorder (!%p1635_p1), %s1628_s24, 0 }
  0x4f   : > { %1324 = dma.done.wait (%p1636_p4), %s234_s29, 1024  }
  0x50   : > { %1326 = vsyncadd (%p1636_p4), %s234_s29, 4294966272  ;;  %p1637_p6 = scmp.eq.s32.totalorder %s1410_s22, 0 }
  0x52   : > { %1328 = dma.done.wait (%p1637_p6), [#allocation6], 2048   ;;  %p1638_p8 = pmov %p1637_p6 }
  0x53   : > { %v1177_v0 = vld [vmem:[#allocation5 + $0x38] sm:$0xff]   ;;  %v1178_v1 = vld [vmem:[#allocation5 + $0x30] sm:$0xff]   ;;  %v1179_v2 = vld [vmem:[#allocation5 + $0x28] sm:$0xff]   ;;  %s1557_s12 = scalar_lea.vmem [#allocation8], %s894_s8  ;;  %s962_s6 = sshll.u32 %s1410_s22, 10 }
  0x54   : > { %1330 = vsyncadd (%p1638_p8), [#allocation6], 4294965248  ;;  %1042 = vmatprep.subr.bf16.mxu0 %v1177_v0  ;;  %v1180_v3 = vld [vmem:[#allocation5 + $0x20] sm:$0xff]   ;;  %v1181_v5 = vld [vmem:[#allocation5 + $0x18] sm:$0xff]   ;;  %s793_s14 = sshll.u32 %s1557_s12, 4  ;;  %s1572_s11 = scalar_lea.hbm %s1622_s5, %s962_s6  ;;  %s1567_s14 = int_to_ptr.vmem [resolvable:$true] %s793_s14 }
  0x55   : > { %1043 = vmatpush3.bf16.msra.mxu0 %v1177_v0  ;;  %v1185_v4 = vld [vmem:[%s1531_s13] sm:$0xff]   ;;  %v1182_v6 = vld [vmem:[#allocation5 + $0x10] sm:$0xff]   ;;  %v1193_v7 = vld [vmem:[#allocation7 + $0x38] sm:$0xff]   ;;  %s780_s17 = scalar_lea.sflag [#allocation4], %s1525_s30  ;;  %s1281_s16 = scalar_lea.vmem %s1567_s14, 1024 }
  0x56   : > { %1044 = vmatprep.subr.bf16.mxu0 %v1178_v1  ;;  %1058 = vmatprep.mubr.bf16.mxu0 %v1185_v4  ;;  %v1194_v8 = vld [vmem:[#allocation7 + $0x30] sm:$0xff]   ;;  %v1183_v9 = vld [vmem:[#allocation5 + $0x8] sm:$0xff]   ;;  %v1184_v11 = vld [vmem:[#allocation5] sm:$0xff]   ;;  %p1282_p5 = scmp.ne.s32.totalorder %s1567_s14, %s1281_s16  ;;  %p1639_p2 = scmp.ne.s32.totalorder %s1632_s23, 0 }
  0x57   : > { %1074 = vmatprep.subr.bf16.mxu1 %v1193_v7  ;;  %v1195_v10 = vld [vmem:[#allocation7 + $0x28] sm:$0xff]   ;;  %v1196_v12 = vld [vmem:[#allocation7 + $0x20] sm:$0xff]   ;;  %v1197_v13 = vld [vmem:[#allocation7 + $0x18] sm:$0xff]   ;;  %s1356_s22 = smov [#allocation8]  }
  0x58   : > { %1075 = vmatpush3.bf16.msra.mxu1 %v1193_v7  ;;  %v1186_v14 = vld [vmem:[%s1531_s13 + $0x8] sm:$0xff]   ;;  %v1187_v15 = vld [vmem:[%s1531_s13 + $0x10] sm:$0xff]   ;;  %v1188_v16 = vld [vmem:[%s1531_s13 + $0x18] sm:$0xff]   ;;  %p1283_p7 = pnand %p1282_p5, %p1639_p2  ;;  %s1285_s8 = sshll.u32 %s1356_s22, 4  ;;  %s1286_s8 = int_to_ptr.vmem [resolvable:$false] %s1285_s8 }
  0x59   : > { %1045 = vmatpush3.bf16.msra.mxu0 %v1178_v1  ;;  %1076 = vmatprep.subr.bf16.mxu1 %v1194_v8  ;;  %v1189_v17 = vld [vmem:[%s1531_s13 + $0x20] sm:$0xff]   ;;  %v1190_v18 = vld [vmem:[%s1531_s13 + $0x28] sm:$0xff]   ;;  %v1191_v19 = vld [vmem:[%s1531_s13 + $0x30] sm:$0xff]   ;;  %s1287_s29 = scalar_lea.vmem %s1286_s8, 2048  ;;  %p1288_p13 = scmp.lt.s32.totalorder %s1567_s14, %s1286_s8 }
  0x5a   : > { %1046 = vmatprep.subr.bf16.mxu0 %v1179_v2  ;;  %v1192_v20 = vld [vmem:[%s1531_s13 + $0x38] sm:$0xff]   ;;  %v1198_v21 = vld [vmem:[#allocation7 + $0x10] sm:$0xff]   ;;  %v1199_v22 = vld [vmem:[#allocation7 + $0x8] sm:$0xff]   ;;  %p1284_p12 = pneg %p1283_p7  ;;  %p1289_p0 = scmp.lt.s32.totalorder %s1287_s29, %s1281_s16 }
  0x5b   : > { %v1200_v23 = vld [vmem:[#allocation7] sm:$0xff]  }
  0x5c   : > { %1077 = vmatpush3.bf16.msra.mxu1 %v1194_v8  ;;  %v898_v26 = vld [vmem:[%s1619_s2] ss:$0 sm:$0xff]  ;;  %p1290_p10 = por %p1289_p0, %p1288_p13 }
  0x5d   : > { %1047 = vmatpush3.bf16.msra.mxu0 %v1179_v2  ;;  %1078 = vmatprep.subr.bf16.mxu1 %v1195_v10 }
  0x5e   : > { %1048 = vmatprep.subr.bf16.mxu0 %v1180_v3  ;;  %p1291_p3 = pnand %p1290_p10, %p1284_p12 }
  0x60   : > { %1079 = vmatpush3.bf16.msra.mxu1 %v1195_v10 }
  0x61   : > { %1049 = vmatpush3.bf16.msra.mxu0 %v1180_v3  ;;  %1080 = vmatprep.subr.bf16.mxu1 %v1196_v12 }
  0x62   : > { %1050 = vmatprep.subr.bf16.mxu0 %v1181_v5 }
  0x64   : > { %1081 = vmatpush3.bf16.msra.mxu1 %v1196_v12 }
  0x65   : > { %1051 = vmatpush3.bf16.msra.mxu0 %v1181_v5  ;;  %1082 = vmatprep.subr.bf16.mxu1 %v1197_v13 }
  0x66   : > { %1052 = vmatprep.subr.bf16.mxu0 %v1182_v6 }
  0x68   : > { %1083 = vmatpush3.bf16.msra.mxu1 %v1197_v13 }
  0x69   : > { %1053 = vmatpush3.bf16.msra.mxu0 %v1182_v6  ;;  %1084 = vmatprep.subr.bf16.mxu1 %v1198_v21 }
  0x6a   : > { %1054 = vmatprep.subr.bf16.mxu0 %v1183_v9 }
  0x6c   : > { %1085 = vmatpush3.bf16.msra.mxu1 %v1198_v21 }
  0x6d   : > { %1055 = vmatpush3.bf16.msra.mxu0 %v1183_v9  ;;  %1086 = vmatprep.subr.bf16.mxu1 %v1199_v22 }
  0x6e   : > { %1056 = vmatprep.subr.bf16.mxu0 %v1184_v11 }
  0x70   : > { %1087 = vmatpush3.bf16.msra.mxu1 %v1199_v22 }
  0x71   : > { %1057 = vmatpush3.bf16.msra.mxu0 %v1184_v11  ;;  %1088 = vmatprep.subr.bf16.mxu1 %v1200_v23 }
  0x74   : > { %1059 = vmatmul.mubr.bf16.vlgmr.msra.gmra.mxu0 %v1186_v14  ;;  %1089 = vmatpush3.bf16.msra.mxu1 %v1200_v23 }
  0x75   : > { %1062 = vmatprep.mubr.bf16.mxu0 %v1187_v15 }
  0x7c   : > { %1063 = vmatmul.mubr.bf16.gmra.mxu0 %v1188_v16 }
  0x7d   : > { %1066 = vmatprep.mubr.bf16.mxu0 %v1189_v17 }
  0x84   : > { %1067 = vmatmul.mubr.bf16.gmra.mxu0 %v1190_v18  ;;  %v915_v18 = vld [vmem:[%s1621_s4] ss:$0 sm:$0xff] }
  0x85   : > { %1070 = vmatprep.mubr.bf16.mxu0 %v1191_v19 }
  0x8c   : > { %1071 = vmatmul.mubr.bf16.gmra.mxu0 %v1192_v20 }
 0x134   : > { %v1060_v24 = vpop.f32.mrf.mxu0 }
 0x135   : > { %v453_v30 = vadd.f32 %v1060_v24, %v898_v26 }
 0x136   : > { %v444_v25 = vpop.f32.mrf.mxu0 }
 0x137   : > { %v445_v28 = vadd.f32 %v898_v26, %v444_v25  ;;  %v509_v37 = vmax.f32 %v453_v30, 0.0 }
 0x138   : > { %v1061_v27 = vpop.f32.mrf.mxu0 }
 0x139   : > { %v456_v29 = vadd.f32 %v1061_v27, %v898_v26  ;;  %v507_v35 = vmax.f32 %v445_v28, 0.0 }
 0x13a   : > { %v447_v31 = vpop.f32.mrf.mxu0 }
 0x13b   : > { %v448_v32 = vadd.f32 %v898_v26, %v447_v31  ;;  %v510_v33 = vmax.f32 %v456_v29, 0.0 }
 0x13c   : > { %v1064_v34 = vpop.f32.mrf.mxu0 }
 0x13d   : > { %v508_v36 = vmax.f32 %v448_v32, 0.0  ;;  %v524_v40 = vpack.c.bf16 %v510_v33, %v509_v37  ;;  %v469_v44 = vadd.f32 %v1064_v34, %v898_v26 }
 0x13e   : > { %v460_v38 = vpop.f32.mrf.mxu0 }
 0x13f   : > { %v523_v39 = vpack.c.bf16 %v508_v36, %v507_v35  ;;  %v461_v42 = vadd.f32 %v898_v26, %v460_v38  ;;  %v513_v51 = vmax.f32 %v469_v44, 0.0 }
 0x140   : > { %v1065_v41 = vpop.f32.mrf.mxu0 }
 0x141   : > { %v472_v43 = vadd.f32 %v1065_v41, %v898_v26  ;;  %1090 = vmatprep.mubr.bf16.mxu1 %v523_v39  ;;  %v511_v49 = vmax.f32 %v461_v42, 0.0 }
 0x142   : > { %v463_v45 = vpop.f32.mrf.mxu0  ;;  %1091 = vmatmul.mubr.bf16.vlgmr.msra.gmra.mxu1 %v524_v40 }
 0x143   : > { %v464_v46 = vadd.f32 %v898_v26, %v463_v45  ;;  %v514_v47 = vmax.f32 %v472_v43, 0.0 }
 0x144   : > { %v1068_v48 = vpop.f32.mrf.mxu0 }
 0x145   : > { %v512_v50 = vmax.f32 %v464_v46, 0.0  ;;  %v526_v54 = vpack.c.bf16 %v514_v47, %v513_v51  ;;  %v485_v58 = vadd.f32 %v1068_v48, %v898_v26 }
 0x146   : > { %v476_v52 = vpop.f32.mrf.mxu0 }
 0x147   : > { %v525_v53 = vpack.c.bf16 %v512_v50, %v511_v49  ;;  %v477_v56 = vadd.f32 %v898_v26, %v476_v52  ;;  %v517_v1 = vmax.f32 %v485_v58, 0.0 }
 0x148   : > { %v1069_v55 = vpop.f32.mrf.mxu0 }
 0x149   : > { %v488_v57 = vadd.f32 %v1069_v55, %v898_v26  ;;  %1094 = vmatprep.mubr.bf16.mxu1 %v525_v53  ;;  %v515_v63 = vmax.f32 %v477_v56, 0.0 }
 0x14a   : > { %v479_v59 = vpop.f32.mrf.mxu0  ;;  %1095 = vmatmul.mubr.bf16.gmra.mxu1 %v526_v54 }
 0x14b   : > { %v480_v60 = vadd.f32 %v898_v26, %v479_v59  ;;  %v518_v61 = vmax.f32 %v488_v57, 0.0 }
 0x14c   : > { %v1072_v62 = vpop.f32.mrf.mxu0 }
 0x14d   : > { %v516_v0 = vmax.f32 %v480_v60, 0.0  ;;  %v528_v4 = vpack.c.bf16 %v518_v61, %v517_v1  ;;  %v501_v8 = vadd.f32 %v1072_v62, %v898_v26 }
 0x14e   : > { %v492_v2 = vpop.f32.mrf.mxu0 }
 0x14f   : > { %v527_v3 = vpack.c.bf16 %v516_v0, %v515_v63  ;;  %v493_v6 = vadd.f32 %v898_v26, %v492_v2  ;;  %v521_v14 = vmax.f32 %v501_v8, 0.0 }
 0x150   : > { %v1073_v5 = vpop.f32.mrf.mxu0 }
 0x151   : > { %v504_v7 = vadd.f32 %v1073_v5, %v898_v26  ;;  %1098 = vmatprep.mubr.bf16.mxu1 %v527_v3  ;;  %v519_v12 = vmax.f32 %v493_v6, 0.0 }
 0x152   : > { %v495_v9 = vpop.f32.mrf.mxu0  ;;  %1099 = vmatmul.mubr.bf16.gmra.mxu1 %v528_v4 }
 0x153   : > { %v496_v10 = vadd.f32 %v898_v26, %v495_v9  ;;  %v522_v11 = vmax.f32 %v504_v7, 0.0 }
 0x155   : > { %v520_v13 = vmax.f32 %v496_v10, 0.0  ;;  %v530_v16 = vpack.c.bf16 %v522_v11, %v521_v14 }
 0x157   : > { %v529_v15 = vpack.c.bf16 %v520_v13, %v519_v12 }
 0x159   : > { %1102 = vmatprep.mubr.bf16.mxu1 %v529_v15 }
 0x15a   : > { %1103 = vmatmul.mubr.bf16.gmra.mxu1 %v530_v16 }
 0x202   : > { %v1092_v17 = vpop.f32.mrf.mxu1 }
 0x203   : > { %v645_v21 = vadd.f32 %v1092_v17, %v915_v18 }
 0x204   : > { %v636_v19 = vpop.f32.mrf.mxu1 }
 0x205   : > { %v637_v24 = vadd.f32 %v915_v18, %v636_v19 }
 0x206   : > { %v1093_v20 = vpop.f32.mrf.mxu1 }
 0x207   : > { %v648_v22 = vadd.f32 %v1093_v20, %v915_v18 }
 0x208   : > { %v639_v23 = vpop.f32.mrf.mxu1 }
 0x209   : > { %v971_v25 = vpack.c.bf16 %v648_v22, %v645_v21  ;;  %v640_v26 = vadd.f32 %v915_v18, %v639_v23 }
 0x20a   : > { %v1096_v27 = vpop.f32.mrf.mxu1 }
 0x20b   : > { %1003 = vst [vmem:[%s1557_s12 + $0x8] sm:$0xff] %v971_v25   ;;  %v966_v28 = vpack.c.bf16 %v640_v26, %v637_v24  ;;  %v661_v31 = vadd.f32 %v1096_v27, %v915_v18 }
 0x20c   : > { %v652_v29 = vpop.f32.mrf.mxu1 }
 0x20d   : > { %967 = vst [vmem:[%s1557_s12] sm:$0xff] %v966_v28   ;;  %v653_v34 = vadd.f32 %v915_v18, %v652_v29 }
 0x20e   : > { %v1097_v30 = vpop.f32.mrf.mxu1 }
 0x20f   : > { %v664_v32 = vadd.f32 %v1097_v30, %v915_v18 }
 0x210   : > { %v655_v33 = vpop.f32.mrf.mxu1 }
 0x211   : > { %v981_v35 = vpack.c.bf16 %v664_v32, %v661_v31  ;;  %v656_v36 = vadd.f32 %v915_v18, %v655_v33 }
 0x212   : > { %v1100_v37 = vpop.f32.mrf.mxu1 }
 0x213   : > { %1005 = vst [vmem:[%s1557_s12 + $0x18] sm:$0xff] %v981_v35   ;;  %v976_v38 = vpack.c.bf16 %v656_v36, %v653_v34  ;;  %v677_v41 = vadd.f32 %v1100_v37, %v915_v18 }
 0x214   : > { %v668_v39 = vpop.f32.mrf.mxu1 }
 0x215   : > { %1004 = vst [vmem:[%s1557_s12 + $0x10] sm:$0xff] %v976_v38   ;;  %v669_v44 = vadd.f32 %v915_v18, %v668_v39 }
 0x216   : > { %v1101_v40 = vpop.f32.mrf.mxu1 }
 0x217   : > { %v680_v42 = vadd.f32 %v1101_v40, %v915_v18 }
 0x218   : > { %v671_v43 = vpop.f32.mrf.mxu1 }
 0x219   : > { %v991_v45 = vpack.c.bf16 %v680_v42, %v677_v41  ;;  %v672_v46 = vadd.f32 %v915_v18, %v671_v43 }
 0x21a   : > { %v1104_v47 = vpop.f32.mrf.mxu1 }
 0x21b   : > { %1007 = vst [vmem:[%s1557_s12 + $0x28] sm:$0xff] %v991_v45   ;;  %v986_v48 = vpack.c.bf16 %v672_v46, %v669_v44  ;;  %v693_v51 = vadd.f32 %v1104_v47, %v915_v18 }
 0x21c   : > { %v684_v49 = vpop.f32.mrf.mxu1 }
 0x21d   : > { %1006 = vst [vmem:[%s1557_s12 + $0x20] sm:$0xff] %v986_v48   ;;  %v685_v54 = vadd.f32 %v915_v18, %v684_v49 }
 0x21e   : > { %v1105_v50 = vpop.f32.mrf.mxu1 }
 0x21f   : > { %v696_v52 = vadd.f32 %v1105_v50, %v915_v18 }
 0x220   : > { %v687_v53 = vpop.f32.mrf.mxu1 }
 0x221   : > { %v1001_v55 = vpack.c.bf16 %v696_v52, %v693_v51  ;;  %v688_v56 = vadd.f32 %v915_v18, %v687_v53 }
 0x223   : > { %1009 = vst [vmem:[%s1557_s12 + $0x38] sm:$0xff] %v1001_v55   ;;  %v996_v57 = vpack.c.bf16 %v688_v56, %v685_v54 }
 0x225   : > { %1008 = vst [vmem:[%s1557_s12 + $0x30] sm:$0xff] %v996_v57  }
 0x226   : > { %1294 = shalt.err (!%p1291_p3)
}
 0x227   : > { %s1295_s13 = scalar_lea.hbm %s1572_s11, 1024  ;;  %s1299_s9 = scalar_lea.hbm %s1622_s5, 2048 }
 0x228   : > { %p1296_p11 = scmp.ne.s32.totalorder %s1572_s11, %s1295_s13  ;;  %p1300_p4 = scmp.lt.s32.totalorder %s1572_s11, %s1622_s5 }
 0x229   : > { %p1301_p6 = scmp.lt.s32.totalorder %s1299_s9, %s1295_s13 }
 0x22a   : > { %p1297_p9 = pnand %p1296_p11, %p1639_p2 }
 0x22b   : > { %p1302_p8 = por %p1301_p6, %p1300_p4 }
 0x22c   : > { %p1298_p1 = pneg %p1297_p9 }
 0x22e   : > { %p1303_p5 = pnand %p1302_p8, %p1298_p1 }
 0x230   : > { %1306 = shalt.err (!%p1303_p5)
}
 0x231   : > { %s1357_s6 = smov 64   ;;  %s1358_s7 = smov 4  }
 0x232   : > { %1116 = dma.vmem_to_hbm [thread:$0]  (%p1639_p2), %s1567_s14, 1024, %s1572_s11, %s780_s17, %s1357_s6, %s1357_s6, %s1358_s7  }
 0x233 PF: > { %s808_s28 = sand.u32 1, %s1337_s18   ;;  %p1640_p7 = scmp.ne.s32.totalorder %s1629_s25, 0 }
 0x234   : > { %p1641_p12 = scmp.ge.s32.totalorder %s1349_s21, 2  ;;  %s809_s16 = scalar_lea.sflag [#allocation4], %s808_s28 }
 0x236   : > { %p1130_p13 = pnand %p1641_p12, %p1640_p7 }
 0x238   : > { %p1131_p0 = pneg %p1130_p13 }
 0x23a   : > { %1332 = dma.done.wait (%p1131_p0), %s809_s16, 1024  }
 0x23b   : > { %1334 = vsyncadd (%p1131_p0), %s809_s16, 4294966272  ;;  %p19_p10 = scmp.ge.s32.totalorder %s1467_s15, 4   ;;  %s1642_s18 = smov %s1341_s19 }
 0x23c   : > { %s1643_s19 = smov %s1345_s20  ;;  %s1644_s20 = smov %s1483_s27 }
 0x23d   : > { %s1645_s21 = smov %s1467_s15  ;;  %21 = sbr.rel (!%p19_p10) target bundleno = 6 (0x6), region = 93 }
 0x242   :  { %814 = vsyncpa [#allocation3], 1 }
 0x243   :  { %816 = vsyncpa [#allocation3 + $0x1], 1 }
 0x244   :  { %817 = vsyncpa [#allocation6], 1 }
 0x245   :  { %818 = vsyncpa [#allocation4], 1 }
 0x246   :  { %820 = vsyncpa [#allocation4 + $0x1], 1 }

</bundles_post_ra>
